<compile_context>
chip_gen: v7x
topology: tpu7x:2x2x1
jax: 0.10.0
libtpu: 0.0.40
codegen_flags: <defaults>
</compile_context>

<pallas_src>
import jax
import jax.numpy as jnp
from jax.experimental import pallas as pl
from jax.experimental.pallas import tpu as pltpu


def _round_up(x, m):
    return (x + m - 1) // m * m


def _cdiv(a, b):
    return (a + b - 1) // b


def _make_kernel(bias_offsets, apply_relu):
    """bias_offsets: per-layer (start, stop) static lane-aligned slices into the fused bias row.
    apply_relu: per-layer bool (static)."""

    def kernel(x_ref, w1_ref, w2_ref, w34_ref, w5_ref, w6_ref, b_ref, out_ref):
        w_refs = (w1_ref, w2_ref, w34_ref, w5_ref, w6_ref)
        n = len(w_refs)
        h = x_ref[...].astype(jnp.bfloat16)                 # (TB, Din_pad) bf16 into the MXU
        for li, w_ref in enumerate(w_refs):
            lo, hi = bias_offsets[li]
            y = jnp.dot(h, w_ref[...], preferred_element_type=jnp.float32)
            y = y + b_ref[:, lo:hi]                         # f32 bias, broadcast over rows
            if apply_relu[li]:
                y = jnp.maximum(y, 0.0)
            h = y.astype(jnp.bfloat16) if li < n - 1 else y  # bf16 into the next MXU pass
        out_ref[...] = h.astype(out_ref.dtype)               # bf16 writeback

    return kernel


def prepare_params(params):
    """One-time (hoisted) parameter prep: collapse the activation-free latent pair, zero-pad
    weights to lane-dense bf16 tiles, fuse all biases into one f32 row.
    `params` is the 6-layer list of (W(in,out), b(1,out)) in f32."""
    input_dim = params[0][0].shape[0]
    d_in_p = _round_up(input_dim, 128)

    (w1, b1), (w2, b2), (w3, b3), (w4, b4), (w5, b5), (w6, b6) = params
    # Collapse Lin(128,lat) ∘ Lin(lat,128): no activation in between, latent never exposed.
    w34 = jnp.dot(w3, w4, preferred_element_type=jnp.float32)
    b34 = jnp.dot(b3.reshape(1, -1), w4, preferred_element_type=jnp.float32) + b4.reshape(1, -1)

    fused = [(w1, b1), (w2, b2), (w34, b34), (w5, b5), (w6, b6)]
    layer_dims = [(d_in_p, 256), (256, 128), (128, 128), (128, 256), (256, d_in_p)]

    ws, bias_chunks, bias_offsets = [], [], []
    off = 0
    for (w, b), (pi, po) in zip(fused, layer_dims):
        fi, fo = w.shape
        wp = jnp.zeros((pi, po), jnp.bfloat16).at[:fi, :fo].set(w.astype(jnp.bfloat16))
        ws.append(wp)
        bp = jnp.zeros((po,), jnp.float32).at[:fo].set(b.reshape(-1).astype(jnp.float32))
        bias_chunks.append(bp)
        bias_offsets.append((off, off + po))
        off += po
    bias_fused = jnp.concatenate(bias_chunks).reshape(1, off)

    return {
        "ws": tuple(ws),
        "bias": bias_fused,
        "bias_offsets": tuple(bias_offsets),
        "input_dim": int(input_dim),
        "d_in_p": int(d_in_p),
    }


def autoencoder_forward(x, prepared, tb_max=2048):
    """x: (batch, input_dim) f32. prepared: output of prepare_params. Returns (batch, input_dim) bf16."""
    batch, input_dim = x.shape
    assert input_dim == prepared["input_dim"]
    d_in_p = prepared["d_in_p"]
    ws = prepared["ws"]
    bias_fused = prepared["bias"]
    bias_offsets = prepared["bias_offsets"]

    # Adaptive batch tiling: choose n_tiles first so padding waste is < 8 rows, keep >= 2 grid
    # steps whenever batch allows (v7x megacore balance), tb a multiple of 8, capped by tb_max.
    batch_r = _round_up(batch, 8)
    n_tiles = max(_cdiv(batch_r, tb_max), 1)
    if n_tiles == 1 and batch_r >= 16:
        n_tiles = 2
    tb = _round_up(_cdiv(batch_r, n_tiles), 8)
    batch_p = n_tiles * tb

    # Input path: direct f32 (cast in-kernel) when already aligned; otherwise one padded bf16 copy.
    if batch_p == batch and d_in_p == input_dim:
        x_in = x
    else:
        x_in = jnp.zeros((batch_p, d_in_p), jnp.bfloat16).at[:batch, :input_dim].set(
            x.astype(jnp.bfloat16))

    grid = (n_tiles,)

    in_specs = [pl.BlockSpec((tb, d_in_p), lambda i: (i, 0))]
    for wp in ws:
        in_specs.append(pl.BlockSpec(wp.shape, lambda i: (0, 0)))      # VMEM-resident weights
    in_specs.append(pl.BlockSpec(bias_fused.shape, lambda i: (0, 0)))  # VMEM-resident fused bias
    out_spec = pl.BlockSpec((tb, d_in_p), lambda i: (i, 0))

    # VMEM budget: resident weights/bias + double-buffered I/O tiles + activation slabs.
    weight_bytes = sum(int(w.size) * 2 for w in ws)
    bias_bytes = int(bias_fused.size) * 4
    x_elt = jnp.dtype(x_in.dtype).itemsize
    io_bytes = 2 * tb * d_in_p * (x_elt + 2)        # double-buffered input + bf16 output tiles
    act_bytes = tb * 256 * (4 + 2) * 2              # rough peak f32 + bf16 activation slabs
    vmem_bytes = int(min(max(2 * (weight_bytes + bias_bytes + io_bytes + act_bytes), 16 << 20),
                         48 << 20))

    flops = 2 * batch_p * sum(int(w.shape[0]) * int(w.shape[1]) for w in ws)
    bytes_accessed = (int(x_in.size) * x_elt + weight_bytes + bias_bytes
                      + batch_p * d_in_p * 2)       # bf16 output

    apply_relu = (True, True, True, True, False)    # ReLU after every layer except the final one

    out_p = pl.pallas_call(
        _make_kernel(bias_offsets, apply_relu),
        out_shape=jax.ShapeDtypeStruct((batch_p, d_in_p), jnp.bfloat16),
        grid=grid,
        in_specs=in_specs,
        out_specs=out_spec,
        compiler_params=pltpu.CompilerParams(
            dimension_semantics=("parallel",),
            vmem_limit_bytes=vmem_bytes),
        cost_estimate=pl.CostEstimate(flops=flops, transcendentals=0,
                                      bytes_accessed=bytes_accessed),
    )(x_in, *ws, bias_fused)

    return out_p[:batch, :input_dim]


def init_params(key, input_dim, latent_dim):
    """Deterministic init matching the PyTorch module's layer shapes.
    nn.Linear(in, out) stores weight (out, in); here it is kept transposed as (in, out)."""
    dims = [(input_dim, 256), (256, 128), (128, latent_dim),
            (latent_dim, 128), (128, 256), (256, input_dim)]
    params = []
    for fan_in, fan_out in dims:
        key, kw, kb = jax.random.split(key, 3)
        bound = 1.0 / jnp.sqrt(fan_in)
        w = jax.random.uniform(kw, (fan_in, fan_out), jnp.float32, -bound, bound)
        b = jax.random.uniform(kb, (1, fan_out), jnp.float32, -bound, bound)
        params.append((w, b))
    return params


def reference_forward(x, params):
    """Pure-JAX f32 reference with the exact PyTorch activation pattern
    (ReLU after every layer except the latent layer and the final layer)."""
    h = x
    for i, (w, b) in enumerate(params):
        h = jnp.dot(h, w) + b
        if i not in (2, 5):
            h = jnp.maximum(h, 0.0)
    return h


if __name__ == "__main__":
    key = jax.random.PRNGKey(0)

    # Test 1: unaligned feature/latent dims -> padded bf16 input path, single grid step.
    batch, input_dim, latent_dim = 8, 64, 32
    kx, kp, key = jax.random.split(key, 3)
    x = jax.random.normal(kx, (batch, input_dim), jnp.float32)
    params = init_params(kp, input_dim, latent_dim)
    prepared = prepare_params(params)

    y = jax.block_until_ready(autoencoder_forward(x, prepared))
    y_ref = reference_forward(x, params)
    assert y.shape == (batch, input_dim)
    assert jnp.allclose(y.astype(jnp.float32), y_ref, atol=3e-2, rtol=3e-2), \
        "mismatch vs f32 reference (test 1)"

    # Test 2: aligned dims -> direct f32 input path (no wrapper pad/cast), 2 grid steps.
    batch2, input_dim2, latent_dim2 = 48, 128, 16
    kx2, kp2, _ = jax.random.split(key, 3)
    x2 = jax.random.normal(kx2, (batch2, input_dim2), jnp.float32)
    params2 = init_params(kp2, input_dim2, latent_dim2)
    prepared2 = prepare_params(params2)

    y2 = jax.block_until_ready(autoencoder_forward(x2, prepared2))
    y2_ref = reference_forward(x2, params2)
    assert y2.shape == (batch2, input_dim2)
    assert jnp.allclose(y2.astype(jnp.float32), y2_ref, atol=3e-2, rtol=3e-2), \
        "mismatch vs f32 reference (test 2)"

    print("KERNEL_OK")
</pallas_src>

<mosaic_0001>
module attributes {stable_mosaic.version = 11 : i64} {
  func.func @kernel(%arg0: i32, %arg1: memref<8x128xbf16, #tpu.memory_space<vmem>>, %arg2: memref<128x256xbf16, #tpu.memory_space<vmem>>, %arg3: memref<256x128xbf16, #tpu.memory_space<vmem>>, %arg4: memref<128x128xbf16, #tpu.memory_space<vmem>>, %arg5: memref<128x256xbf16, #tpu.memory_space<vmem>>, %arg6: memref<256x128xbf16, #tpu.memory_space<vmem>>, %arg7: memref<1x896xf32, #tpu.memory_space<vmem>>, %arg8: memref<8x128xbf16, #tpu.memory_space<vmem>>) attributes {dimension_semantics = [#tpu.dimension_semantics<parallel>], iteration_bounds = array<i64: 1>, scalar_prefetch = 0 : i64, scratch_operands = 0 : i64, tpu.core_type = #tpu.core_type<tc>, window_params = [{transform_indices = @transform_0, window_bounds = array<i64: 8, 128>}, {pipeline_mode = #tpu.pipeline_mode<synchronous>, transform_indices = @transform_1, window_bounds = array<i64: 128, 256>}, {pipeline_mode = #tpu.pipeline_mode<synchronous>, transform_indices = @transform_2, window_bounds = array<i64: 256, 128>}, {pipeline_mode = #tpu.pipeline_mode<synchronous>, transform_indices = @transform_3, window_bounds = array<i64: 128, 128>}, {pipeline_mode = #tpu.pipeline_mode<synchronous>, transform_indices = @transform_4, window_bounds = array<i64: 128, 256>}, {pipeline_mode = #tpu.pipeline_mode<synchronous>, transform_indices = @transform_5, window_bounds = array<i64: 256, 128>}, {pipeline_mode = #tpu.pipeline_mode<synchronous>, transform_indices = @transform_6, window_bounds = array<i64: 1, 896>}, {transform_indices = @transform_7, window_bounds = array<i64: 8, 128>}]} {
    %c0 = arith.constant 0 : index
    %c0_0 = arith.constant 0 : index
    %0 = vector.load %arg1[%c0, %c0_0] : memref<8x128xbf16, #tpu.memory_space<vmem>>, vector<8x128xbf16>
    %c0_1 = arith.constant 0 : index
    %c0_2 = arith.constant 0 : index
    %1 = vector.load %arg2[%c0_1, %c0_2] : memref<128x256xbf16, #tpu.memory_space<vmem>>, vector<128x256xbf16>
    %cst = arith.constant dense<0.000000e+00> : vector<8x256xf32>
    %2 = tpu.matmul %0, %1, %cst {dimension_numbers = #tpu.dot_dimension_numbers<[1], [0], [0], [1], [0, 0, 1, 1], [], []>} : vector<8x128xbf16>, vector<128x256xbf16>, vector<8x256xf32> -> vector<8x256xf32>
    %c0_3 = arith.constant 0 : index
    %c0_4 = arith.constant 0 : index
    %3 = vector.load %arg7[%c0_3, %c0_4] : memref<1x896xf32, #tpu.memory_space<vmem>>, vector<1x256xf32>
    %4 = vector.broadcast %3 : vector<1x256xf32> to vector<8x256xf32>
    %5 = arith.addf %2, %4 : vector<8x256xf32>
    %cst_5 = arith.constant 0.000000e+00 : f32
    %6 = vector.broadcast %cst_5 : f32 to vector<8x256xf32>
    %7 = arith.maximumf %5, %6 : vector<8x256xf32>
    %8 = arith.truncf %7 : vector<8x256xf32> to vector<8x256xbf16>
    %c0_6 = arith.constant 0 : index
    %c0_7 = arith.constant 0 : index
    %9 = vector.load %arg3[%c0_6, %c0_7] : memref<256x128xbf16, #tpu.memory_space<vmem>>, vector<256x128xbf16>
    %cst_8 = arith.constant dense<0.000000e+00> : vector<8x128xf32>
    %10 = tpu.matmul %8, %9, %cst_8 {dimension_numbers = #tpu.dot_dimension_numbers<[1], [0], [0], [1], [0, 0, 1, 1], [], []>} : vector<8x256xbf16>, vector<256x128xbf16>, vector<8x128xf32> -> vector<8x128xf32>
    %c0_9 = arith.constant 0 : index
    %c256 = arith.constant 256 : index
    %11 = vector.load %arg7[%c0_9, %c256] : memref<1x896xf32, #tpu.memory_space<vmem>>, vector<1x128xf32>
    %12 = vector.broadcast %11 : vector<1x128xf32> to vector<8x128xf32>
    %13 = arith.addf %10, %12 : vector<8x128xf32>
    %cst_10 = arith.constant 0.000000e+00 : f32
    %14 = vector.broadcast %cst_10 : f32 to vector<8x128xf32>
    %15 = arith.maximumf %13, %14 : vector<8x128xf32>
    %16 = arith.truncf %15 : vector<8x128xf32> to vector<8x128xbf16>
    %c0_11 = arith.constant 0 : index
    %c0_12 = arith.constant 0 : index
    %17 = vector.load %arg4[%c0_11, %c0_12] : memref<128x128xbf16, #tpu.memory_space<vmem>>, vector<128x128xbf16>
    %cst_13 = arith.constant dense<0.000000e+00> : vector<8x128xf32>
    %18 = tpu.matmul %16, %17, %cst_13 {dimension_numbers = #tpu.dot_dimension_numbers<[1], [0], [0], [1], [0, 0, 1, 1], [], []>} : vector<8x128xbf16>, vector<128x128xbf16>, vector<8x128xf32> -> vector<8x128xf32>
    %c0_14 = arith.constant 0 : index
    %c384 = arith.constant 384 : index
    %19 = vector.load %arg7[%c0_14, %c384] : memref<1x896xf32, #tpu.memory_space<vmem>>, vector<1x128xf32>
    %20 = vector.broadcast %19 : vector<1x128xf32> to vector<8x128xf32>
    %21 = arith.addf %18, %20 : vector<8x128xf32>
    %cst_15 = arith.constant 0.000000e+00 : f32
    %22 = vector.broadcast %cst_15 : f32 to vector<8x128xf32>
    %23 = arith.maximumf %21, %22 : vector<8x128xf32>
    %24 = arith.truncf %23 : vector<8x128xf32> to vector<8x128xbf16>
    %c0_16 = arith.constant 0 : index
    %c0_17 = arith.constant 0 : index
    %25 = vector.load %arg5[%c0_16, %c0_17] : memref<128x256xbf16, #tpu.memory_space<vmem>>, vector<128x256xbf16>
    %cst_18 = arith.constant dense<0.000000e+00> : vector<8x256xf32>
    %26 = tpu.matmul %24, %25, %cst_18 {dimension_numbers = #tpu.dot_dimension_numbers<[1], [0], [0], [1], [0, 0, 1, 1], [], []>} : vector<8x128xbf16>, vector<128x256xbf16>, vector<8x256xf32> -> vector<8x256xf32>
    %c0_19 = arith.constant 0 : index
    %c512 = arith.constant 512 : index
    %27 = vector.load %arg7[%c0_19, %c512] : memref<1x896xf32, #tpu.memory_space<vmem>>, vector<1x256xf32>
    %28 = vector.broadcast %27 : vector<1x256xf32> to vector<8x256xf32>
    %29 = arith.addf %26, %28 : vector<8x256xf32>
    %cst_20 = arith.constant 0.000000e+00 : f32
    %30 = vector.broadcast %cst_20 : f32 to vector<8x256xf32>
    %31 = arith.maximumf %29, %30 : vector<8x256xf32>
    %32 = arith.truncf %31 : vector<8x256xf32> to vector<8x256xbf16>
    %c0_21 = arith.constant 0 : index
    %c0_22 = arith.constant 0 : index
    %33 = vector.load %arg6[%c0_21, %c0_22] : memref<256x128xbf16, #tpu.memory_space<vmem>>, vector<256x128xbf16>
    %cst_23 = arith.constant dense<0.000000e+00> : vector<8x128xf32>
    %34 = tpu.matmul %32, %33, %cst_23 {dimension_numbers = #tpu.dot_dimension_numbers<[1], [0], [0], [1], [0, 0, 1, 1], [], []>} : vector<8x256xbf16>, vector<256x128xbf16>, vector<8x128xf32> -> vector<8x128xf32>
    %c0_24 = arith.constant 0 : index
    %c768 = arith.constant 768 : index
    %35 = vector.load %arg7[%c0_24, %c768] : memref<1x896xf32, #tpu.memory_space<vmem>>, vector<1x128xf32>
    %36 = vector.broadcast %35 : vector<1x128xf32> to vector<8x128xf32>
    %37 = arith.addf %34, %36 : vector<8x128xf32>
    %38 = arith.truncf %37 : vector<8x128xf32> to vector<8x128xbf16>
    %c0_25 = arith.constant 0 : index
    %c0_26 = arith.constant 0 : index
    %39 = vector.load %arg8[%c0_25, %c0_26] : memref<8x128xbf16, #tpu.memory_space<vmem>>, vector<8x128xbf16>
    tpu.vector_store %arg8[%c0_25, %c0_26], %38 {strides = array<i32>} : memref<8x128xbf16, #tpu.memory_space<vmem>>, vector<8x128xbf16>,
    return
  }
  func.func @transform_0(%arg0: i32) -> (i32, i32) {
    %c0_i32 = arith.constant 0 : i32
    %c0_i32_0 = arith.constant 0 : i32
    return %arg0, %c0_i32 : i32, i32
  }
  func.func @transform_1(%arg0: i32) -> (i32, i32) {
    %c0_i32 = arith.constant 0 : i32
    %c0_i32_0 = arith.constant 0 : i32
    %c0_i32_1 = arith.constant 0 : i32
    return %c0_i32, %c0_i32_0 : i32, i32
  }
  func.func @transform_2(%arg0: i32) -> (i32, i32) {
    %c0_i32 = arith.constant 0 : i32
    %c0_i32_0 = arith.constant 0 : i32
    %c0_i32_1 = arith.constant 0 : i32
    return %c0_i32, %c0_i32_0 : i32, i32
  }
  func.func @transform_3(%arg0: i32) -> (i32, i32) {
    %c0_i32 = arith.constant 0 : i32
    %c0_i32_0 = arith.constant 0 : i32
    %c0_i32_1 = arith.constant 0 : i32
    return %c0_i32, %c0_i32_0 : i32, i32
  }
  func.func @transform_4(%arg0: i32) -> (i32, i32) {
    %c0_i32 = arith.constant 0 : i32
    %c0_i32_0 = arith.constant 0 : i32
    %c0_i32_1 = arith.constant 0 : i32
    return %c0_i32, %c0_i32_0 : i32, i32
  }
  func.func @transform_5(%arg0: i32) -> (i32, i32) {
    %c0_i32 = arith.constant 0 : i32
    %c0_i32_0 = arith.constant 0 : i32
    %c0_i32_1 = arith.constant 0 : i32
    return %c0_i32, %c0_i32_0 : i32, i32
  }
  func.func @transform_6(%arg0: i32) -> (i32, i32) {
    %c0_i32 = arith.constant 0 : i32
    %c0_i32_0 = arith.constant 0 : i32
    %c0_i32_1 = arith.constant 0 : i32
    return %c0_i32, %c0_i32_0 : i32, i32
  }
  func.func @transform_7(%arg0: i32) -> (i32, i32) {
    %c0_i32 = arith.constant 0 : i32
    %c0_i32_0 = arith.constant 0 : i32
    return %arg0, %c0_i32 : i32, i32
  }
}

</mosaic_0001>

<bundles_post_ra>
// kernel: tpu_custom_call.1
= control target key start
LH: loop header
LB: loop body
LE: loop exit
PB: predicated region body
PF: predicated region fallthrough
CT: control target
= control target key end

     0   :  { %12 = vsyncpa [#allocation3], 0  ;;  %s1496_s0 = inlined_call_operand.hbm [shape: bf16[8,128], index: 0, kind: input, shape index: {}]   ;;  %s1497_s1 = inlined_call_operand.hbm [shape: bf16[128,256], index: 1, kind: input, shape index: {}]   ;;  %s1498_s2 = inlined_call_operand.hbm [shape: bf16[256,128], index: 2, kind: input, shape index: {}]   ;;  %s1499_s3 = inlined_call_operand.hbm [shape: bf16[128,128], index: 3, kind: input, shape index: {}]   ;;  %s1500_s4 = inlined_call_operand.hbm [shape: bf16[128,256], index: 4, kind: input, shape index: {}]   ;;  %s1501_s5 = inlined_call_operand.hbm [shape: bf16[256,128], index: 5, kind: input, shape index: {}]   ;;  %s1502_s6 = inlined_call_operand.vmem [shape: f32[1,896], index: 6, kind: input, shape index: {}]   ;;  %s1503_s7 = inlined_call_operand.hbm [shape: bf16[8,128], index: 7, kind: output, shape index: {}]  }
   0x1   :  { %13 = vsyncpa [#allocation6], 0 }
   0x2   :  { %14 = vsyncpa [#allocation9], 0 }
   0x3   :  { %15 = vsyncpa [#allocation12], 0 }
   0x4   :  { %16 = vsyncpa [#allocation4], 0  ;;  %s1314_s24 = smov [#allocation5]   ;;  %s1150_s28 = scalar_lea.hbm %s1497_s1, 2048 }
   0x5   :  { %s32_s25 = sshll.u32 %s1314_s24, 4  ;;  %p1151_p0 = scmp.ne.s32.totalorder %s1497_s1, %s1150_s28  ;;  %s33_s25 = int_to_ptr.vmem [resolvable:$true] %s32_s25 }
   0x6   :  { %p1154_p1 = scmp.lt.u32.totalorder %s1150_s28, %s1497_s1 }
   0x8   :  { %p1156_p2 = pnand %p1154_p1, %p1151_p0 }
   0xa   :  { %1159 = shalt.err (!%p1156_p2)
}
   0xb   :  { %s1160_s10 = scalar_lea.vmem %s33_s25, 2048  ;;  %p1165_p4 = scmp.lt.s32.totalorder %s33_s25, %s33_s25 }
   0xc   :  { %p1161_p3 = scmp.ne.s32.totalorder %s33_s25, %s1160_s10  ;;  %p1166_p5 = scmp.lt.s32.totalorder %s1160_s10, %s1160_s10 }
   0xe   :  { %p1167_p6 = por %p1166_p5, %p1165_p4 }
  0x10   :  { %p1168_p7 = pnand %p1167_p6, %p1161_p3 }
  0x12   :  { %1171 = shalt.err (!%p1168_p7)
}
  0x13   :  { %s1315_s11 = smov 128   ;;  %s1316_s12 = smov 8  }
  0x14   :  { %38 = dma.hbm_to_vmem [thread:$0]  %s1497_s1, 2048, %s33_s25, [#allocation6], %s1315_s11, %s1315_s11, %s1316_s12  }
  0x15   :  { %s1317_s15 = smov [#allocation8]   ;;  %s1318_s17 = smov [#allocation2]  }
  0x16   :  { %s56_s16 = sshll.u32 %s1317_s15, 4  ;;  %s23_s18 = sshll.u32 %s1318_s17, 4  ;;  %s57_s16 = int_to_ptr.vmem [resolvable:$true] %s56_s16  ;;  %s24_s18 = int_to_ptr.vmem [resolvable:$true] %s23_s18 }
  0x17   :  { %s1172_s21 = scalar_lea.hbm %s1499_s3, 1024 }
  0x18   :  { %p1173_p8 = scmp.ne.s32.totalorder %s1499_s3, %s1172_s21  ;;  %p1176_p9 = scmp.lt.u32.totalorder %s1172_s21, %s1499_s3 }
  0x1a   :  { %p1178_p10 = pnand %p1176_p9, %p1173_p8 }
  0x1c   :  { %1181 = shalt.err (!%p1178_p10)
}
  0x1d   :  { %s1182_s1 = scalar_lea.vmem %s57_s16, 1024  ;;  %p1187_p12 = scmp.lt.s32.totalorder %s57_s16, %s57_s16 }
  0x1e   :  { %p1183_p11 = scmp.ne.s32.totalorder %s57_s16, %s1182_s1  ;;  %p1188_p13 = scmp.lt.s32.totalorder %s1182_s1, %s1182_s1 }
  0x20   :  { %p1189_p0 = por %p1188_p13, %p1187_p12 }
  0x22   :  { %p1190_p1 = pnand %p1189_p0, %p1183_p11 }
  0x24   :  { %1193 = shalt.err (!%p1190_p1)
}
  0x25   :  { %s1319_s25 = smov 64   ;;  %s1320_s27 = smov 4  }
  0x26   :  { %62 = dma.hbm_to_vmem [thread:$0]  %s1499_s3, 1024, %s57_s16, [#allocation9], %s1319_s25, %s1319_s25, %s1320_s27  }
  0x27   :  { %s1194_s9 = scalar_lea.hbm %s1496_s0, 64 }
  0x28   :  { %p1195_p2 = scmp.ne.s32.totalorder %s1496_s0, %s1194_s9  ;;  %p1198_p3 = scmp.lt.u32.totalorder %s1194_s9, %s1496_s0 }
  0x2a   :  { %p1200_p4 = pnand %p1198_p3, %p1195_p2 }
  0x2c   :  { %1203 = shalt.err (!%p1200_p4)
}
  0x2d   :  { %s1204_s17 = scalar_lea.vmem %s24_s18, 64  ;;  %p1209_p6 = scmp.lt.s32.totalorder %s24_s18, %s24_s18 }
  0x2e   :  { %p1205_p5 = scmp.ne.s32.totalorder %s24_s18, %s1204_s17  ;;  %p1210_p7 = scmp.lt.s32.totalorder %s1204_s17, %s1204_s17 }
  0x30   :  { %p1211_p8 = por %p1210_p7, %p1209_p6 }
  0x32   :  { %p1212_p9 = pnand %p1211_p8, %p1205_p5 }
  0x34   :  { %1215 = shalt.err (!%p1212_p9)
}
  0x35   :  { %26 = dma.hbm_to_vmem [thread:$0]  %s1496_s0, 64, %s24_s18, [#allocation3]  }
  0x36   :  { %s1321_s19 = smov [#allocation7]   ;;  %s1322_s21 = smov [#allocation10]  }
  0x37   :  { %s44_s20 = sshll.u32 %s1321_s19, 4  ;;  %s68_s22 = sshll.u32 %s1322_s21, 4  ;;  %s45_s20 = int_to_ptr.vmem [resolvable:$true] %s44_s20  ;;  %s69_s22 = int_to_ptr.vmem [resolvable:$true] %s68_s22 }
  0x38   :  { %s1216_s26 = scalar_lea.hbm %s1498_s2, 2048 }
  0x39   :  { %p1217_p10 = scmp.ne.s32.totalorder %s1498_s2, %s1216_s26  ;;  %p1220_p11 = scmp.lt.u32.totalorder %s1216_s26, %s1498_s2 }
  0x3b   :  { %p1222_p12 = pnand %p1220_p11, %p1217_p10 }
  0x3d   :  { %1225 = shalt.err (!%p1222_p12)
}
  0x3e   :  { %s1226_s0 = scalar_lea.vmem %s45_s20, 2048  ;;  %p1231_p0 = scmp.lt.s32.totalorder %s45_s20, %s45_s20 }
  0x3f   :  { %p1227_p13 = scmp.ne.s32.totalorder %s45_s20, %s1226_s0  ;;  %p1232_p1 = scmp.lt.s32.totalorder %s1226_s0, %s1226_s0 }
  0x41   :  { %p1233_p2 = por %p1232_p1, %p1231_p0 }
  0x43   :  { %p1234_p3 = pnand %p1233_p2, %p1227_p13 }
  0x45   :  { %1237 = shalt.err (!%p1234_p3)
}
  0x46   :  { %50 = dma.hbm_to_vmem [thread:$0]  %s1498_s2, 2048, %s45_s20, [#allocation6], %s1319_s25, %s1319_s25, %s1320_s27  }
  0x47   :  { %s1238_s13 = scalar_lea.hbm %s1500_s4, 2048 }
  0x48   :  { %p1239_p4 = scmp.ne.s32.totalorder %s1500_s4, %s1238_s13  ;;  %p1242_p5 = scmp.lt.u32.totalorder %s1238_s13, %s1500_s4 }
  0x4a   :  { %p1244_p6 = pnand %p1242_p5, %p1239_p4 }
  0x4c   :  { %1247 = shalt.err (!%p1244_p6)
}
  0x4d   :  { %s1248_s16 = scalar_lea.vmem %s69_s22, 2048  ;;  %p1253_p8 = scmp.lt.s32.totalorder %s69_s22, %s69_s22 }
  0x4e   :  { %p1249_p7 = scmp.ne.s32.totalorder %s69_s22, %s1248_s16  ;;  %p1254_p9 = scmp.lt.s32.totalorder %s1248_s16, %s1248_s16 }
  0x50   :  { %p1255_p10 = por %p1254_p9, %p1253_p8 }
  0x52   :  { %p1256_p11 = pnand %p1255_p10, %p1249_p7 }
  0x54   :  { %1259 = shalt.err (!%p1256_p11)
}
  0x55   :  { %74 = dma.hbm_to_vmem [thread:$0]  %s1500_s4, 2048, %s69_s22, [#allocation9], %s1315_s11, %s1315_s11, %s1316_s12  }
  0x56   :  { %s1323_s20 = smov [#allocation11]   ;;  %s1260_s26 = scalar_lea.hbm %s1501_s5, 2048 }
  0x57   :  { %s80_s21 = sshll.u32 %s1323_s20, 4  ;;  %p1261_p12 = scmp.ne.s32.totalorder %s1501_s5, %s1260_s26  ;;  %s81_s21 = int_to_ptr.vmem [resolvable:$true] %s80_s21 }
  0x58   :  { %p1264_p13 = scmp.lt.u32.totalorder %s1260_s26, %s1501_s5 }
  0x5a   :  { %p1266_p0 = pnand %p1264_p13, %p1261_p12 }
  0x5c   :  { %1269 = shalt.err (!%p1266_p0)
}
  0x5d   :  { %s1270_s0 = scalar_lea.vmem %s81_s21, 2048  ;;  %p1275_p2 = scmp.lt.s32.totalorder %s81_s21, %s81_s21 }
  0x5e   :  { %p1271_p1 = scmp.ne.s32.totalorder %s81_s21, %s1270_s0  ;;  %p1276_p3 = scmp.lt.s32.totalorder %s1270_s0, %s1270_s0 }
  0x60   :  { %p1277_p4 = por %p1276_p3, %p1275_p2 }
  0x62   :  { %p1278_p5 = pnand %p1277_p4, %p1271_p1 }
  0x64   :  { %1281 = shalt.err (!%p1278_p5)
}
  0x65   :  { %86 = dma.hbm_to_vmem [thread:$0]  %s1501_s5, 2048, %s81_s21, [#allocation12], %s1319_s25, %s1319_s25, %s1320_s27  }
  0x66   :  { %1304 = dma.done.wait [#allocation3], 64  }
  0x67   :  { %1305 = vsyncadd [#allocation3], 4294967232 }
  0x68   :  { %1306 = dma.done.wait [#allocation6], 4096  }
  0x69   :  { %1307 = vsyncadd [#allocation6], 4294963200 }
  0x6a   :  { %1308 = dma.done.wait [#allocation9], 3072  }
  0x6b   :  { %1309 = vsyncadd [#allocation9], 4294964224 }
  0x6c   :  { %1310 = dma.done.wait [#allocation12], 2048  }
  0x6d   :  { %1311 = vsyncadd [#allocation12], 4294965248  ;;  %v1324_v0 = vmov 0   ;;  %v1062_v1 = vld [vmem:[#allocation5 + $0x4] ss:$8 sps:$4 sm:$0xff]   ;;  %v1090_v15 = vld [vmem:[#allocation7 + $0x50] sm:$0xff]   ;;  %v127_v41 = vlaneseq }
  0x6e   :  { %249 = vmatprep.mubr.bf16.mxu0 %v1324_v0  ;;  %v1064_v2 = vld [vmem:[#allocation5] ss:$8 sps:$4 sm:$0xff]   ;;  %217 = vmatprep.subr.bf16.mxu0 %v1062_v1  ;;  %v1065_v3 = vld [vmem:[#allocation5 + $0x14] ss:$8 sps:$4 sm:$0xff]   ;;  %v1067_v4 = vld [vmem:[#allocation5 + $0x10] ss:$8 sps:$4 sm:$0xff]  }
  0x6f   :  { %218 = vmatpush1.bf16.msra.mxu0 %v1064_v2  ;;  %v1068_v5 = vld [vmem:[#allocation5 + $0x24] ss:$8 sps:$4 sm:$0xff]   ;;  %v1070_v6 = vld [vmem:[#allocation5 + $0x20] ss:$8 sps:$4 sm:$0xff]   ;;  %v1071_v7 = vld [vmem:[#allocation5 + $0x34] ss:$8 sps:$4 sm:$0xff]  }
  0x70   :  { %219 = vmatprep.subr.bf16.mxu0 %v1065_v3  ;;  %v1073_v8 = vld [vmem:[#allocation5 + $0x30] ss:$8 sps:$4 sm:$0xff]   ;;  %v1074_v9 = vld [vmem:[#allocation5 + $0x44] ss:$8 sps:$4 sm:$0xff]   ;;  %v1076_v12 = vld [vmem:[#allocation5 + $0x40] ss:$8 sps:$4 sm:$0xff]  }
  0x71   :  { %v1086_v10 = vld [vmem:[#allocation7 + $0x40] sm:$0xff]   ;;  %v1088_v13 = vld [vmem:[#allocation7 + $0x48] sm:$0xff]   ;;  %v1077_v16 = vld [vmem:[#allocation5 + $0x54] ss:$8 sps:$4 sm:$0xff]   ;;  %v1325_v35 = vmov 0.0   ;;  %v1456_v42 = vshrl.u32 %v127_v41, 7 }
  0x72   :  { %v1087_v11 = vld [vmem:[#allocation7] sm:$0xff]   ;;  %975 = vmatprep.subr.bf16.mxu1 %v1086_v10  ;;  %v1089_v14 = vld [vmem:[#allocation7 + $0x8] sm:$0xff]   ;;  %v1079_v17 = vld [vmem:[#allocation5 + $0x50] ss:$8 sps:$4 sm:$0xff]   ;;  %vm1326_vm0 = vmmov 0   ;;  %s1327_s14 = smov [#allocation13]  }
  0x73   :  { %220 = vmatpush1.bf16.msra.mxu0 %v1067_v4  ;;  %976 = vmatpush3.bf16.msra.mxu1 %v1087_v11  ;;  %v1091_v18 = vld [vmem:[#allocation7 + $0x10] sm:$0xff]   ;;  %v1092_v19 = vld [vmem:[#allocation7 + $0x58] sm:$0xff]   ;;  %v1080_v20 = vld [vmem:[#allocation5 + $0x64] ss:$8 sps:$4 sm:$0xff]   ;;  %v129_v43 = vsub.s32 0, %v1456_v42  ;;  %v133_v45 = vsub.s32 1, %v1456_v42 }
  0x74   :  { %221 = vmatprep.subr.bf16.mxu0 %v1068_v5  ;;  %977 = vmatprep.subr.bf16.mxu1 %v1088_v13  ;;  %v1082_v21 = vld [vmem:[#allocation5 + $0x60] ss:$8 sps:$4 sm:$0xff]   ;;  %v1083_v22 = vld [vmem:[#allocation5 + $0x74] ss:$8 sps:$4 sm:$0xff]   ;;  %v1085_v26 = vld [vmem:[#allocation5 + $0x70] ss:$8 sps:$4 sm:$0xff]  }
  0x75   :  { %v1093_v23 = vld [vmem:[#allocation7 + $0x18] sm:$0xff]   ;;  %v1094_v24 = vld [vmem:[#allocation7 + $0x60] sm:$0xff]   ;;  %v1096_v27 = vld [vmem:[#allocation7 + $0x68] sm:$0xff]   ;;  %s888_s15 = sshll.u32 %s1327_s14, 4  ;;  %s889_s15 = int_to_ptr.vmem [resolvable:$true] %s888_s15 }
  0x76   :  { %v1095_v25 = vld [vmem:[#allocation7 + $0x20] sm:$0xff]   ;;  %v1097_v28 = vld [vmem:[#allocation7 + $0x28] sm:$0xff]   ;;  %v108_v29 = vld [vmem:[#allocation2] sm:$0xf]  ;;  %s1282_s17 = scalar_lea.vmem %s889_s15, 64  ;;  %p1287_p7 = scmp.lt.s32.totalorder %s889_s15, %s889_s15 }
  0x77   :  { %222 = vmatpush1.bf16.msra.mxu0 %v1070_v6  ;;  %978 = vmatpush3.bf16.msra.mxu1 %v1089_v14  ;;  %v1098_v30 = vld [vmem:[#allocation7 + $0x70] sm:$0xff]   ;;  %v1100_v32 = vld [vmem:[#allocation7 + $0x78] sm:$0xff]   ;;  %v1102_v34 = vld [vmem:[#allocation8] sm:$0xff]   ;;  %p1283_p6 = scmp.ne.s32.totalorder %s889_s15, %s1282_s17  ;;  %p1288_p8 = scmp.lt.s32.totalorder %s1282_s17, %s1282_s17 }
  0x78   :  { %223 = vmatprep.subr.bf16.mxu0 %v1071_v7  ;;  %979 = vmatprep.subr.bf16.mxu1 %v1090_v15  ;;  %v1099_v31 = vld [vmem:[#allocation7 + $0x30] sm:$0xff]   ;;  %v1101_v33 = vld [vmem:[#allocation7 + $0x38] sm:$0xff]   ;;  %v1103_v36 = vld [vmem:[#allocation8 + $0x8] sm:$0xff]  }
  0x79   :  { %v1104_v37 = vld [vmem:[#allocation8 + $0x10] sm:$0xff]   ;;  %v1105_v38 = vld [vmem:[#allocation8 + $0x18] sm:$0xff]   ;;  %v1106_v39 = vld [vmem:[#allocation8 + $0x20] sm:$0xff]   ;;  %p1289_p9 = por %p1288_p8, %p1287_p7 }
  0x7a   :  { %v1107_v40 = vld [vmem:[#allocation8 + $0x28] sm:$0xff]   ;;  %v125_v44 = vld [vmem:[%s1502_s6] sm:$0x3]  ;;  %v1109_v59 = vld [vmem:[#allocation8 + $0x38] sm:$0xff]  }
  0x7b   :  { %224 = vmatpush1.bf16.msra.mxu0 %v1073_v8  ;;  %980 = vmatpush3.bf16.msra.mxu1 %v1091_v18  ;;  %v130_v46 = vrot.slane %v125_v44, %v129_v43  ;;  %v134_v47 = vrot.slane %v125_v44, %v133_v45  ;;  %v1108_v58 = vld [vmem:[#allocation8 + $0x30] sm:$0xff]   ;;  %v1110_v60 = vld [vmem:[#allocation10] ss:$8 sps:$4 sm:$0xff]   ;;  %v1112_v61 = vld [vmem:[#allocation10 + $0x4] ss:$8 sps:$4 sm:$0xff]   ;;  %p1290_p10 = pnand %p1289_p9, %p1283_p6 }
  0x7c   :  { %225 = vmatprep.subr.bf16.mxu0 %v1074_v9  ;;  %981 = vmatprep.subr.bf16.mxu1 %v1092_v19  ;;  %v1115_v62 = vld [vmem:[#allocation10 + $0x14] ss:$8 sps:$4 sm:$0xff]   ;;  %v1113_v63 = vld [vmem:[#allocation10 + $0x10] ss:$8 sps:$4 sm:$0xff]   ;;  %v1118_v1 = vld [vmem:[#allocation10 + $0x24] ss:$8 sps:$4 sm:$0xff]  }
  0x7d   :  { %v1116_v2 = vld [vmem:[#allocation10 + $0x20] ss:$8 sps:$4 sm:$0xff]   ;;  %v1121_v3 = vld [vmem:[#allocation10 + $0x34] ss:$8 sps:$4 sm:$0xff]   ;;  %v1124_v4 = vld [vmem:[#allocation10 + $0x44] ss:$8 sps:$4 sm:$0xff]  }
  0x7e   :  { %v1122_v5 = vld [vmem:[#allocation10 + $0x40] ss:$8 sps:$4 sm:$0xff]   ;;  %v1127_v6 = vld [vmem:[#allocation10 + $0x54] ss:$8 sps:$4 sm:$0xff]   ;;  %v1125_v7 = vld [vmem:[#allocation10 + $0x50] ss:$8 sps:$4 sm:$0xff]  }
  0x7f   :  { %226 = vmatpush1.bf16.msra.mxu0 %v1076_v12  ;;  %982 = vmatpush3.bf16.msra.mxu1 %v1093_v23  ;;  %v1130_v8 = vld [vmem:[#allocation10 + $0x64] ss:$8 sps:$4 sm:$0xff]   ;;  %v1128_v9 = vld [vmem:[#allocation10 + $0x60] ss:$8 sps:$4 sm:$0xff]   ;;  %v916_v11 = vld [vmem:[%s1502_s6 + $0x2] ss:$0 sm:$0xff] }
  0x80   :  { %227 = vmatprep.subr.bf16.mxu0 %v1077_v16  ;;  %983 = vmatprep.subr.bf16.mxu1 %v1094_v24  ;;  %v1133_v19 = vld [vmem:[#allocation10 + $0x74] ss:$8 sps:$4 sm:$0xff]   ;;  %v1136_v23 = vld [vmem:[#allocation11 + $0x48] sm:$0xff]  }
  0x81   :  { %v1137_v24 = vld [vmem:[#allocation11 + $0x8] sm:$0xff]   ;;  %v1146_v41 = vld [vmem:[#allocation11 + $0x70] sm:$0xff]  }
  0x82   :  { %v1147_v44 = vld [vmem:[#allocation11 + $0x30] sm:$0xff]  }
  0x83   :  { %228 = vmatpush1.bf16.msra.mxu0 %v1079_v17  ;;  %984 = vmatpush3.bf16.msra.mxu1 %v1095_v25  ;;  %v1138_v25 = vld [vmem:[#allocation11 + $0x50] sm:$0xff]  }
  0x84   :  { %229 = vmatprep.subr.bf16.mxu0 %v1080_v20  ;;  %985 = vmatprep.subr.bf16.mxu1 %v1096_v27  ;;  %v1131_v20 = vld [vmem:[#allocation10 + $0x70] ss:$8 sps:$4 sm:$0xff]  }
  0x85   :  { %v1140_v27 = vld [vmem:[#allocation11 + $0x58] sm:$0xff]  }
  0x87   :  { %230 = vmatpush1.bf16.msra.mxu0 %v1082_v21  ;;  %986 = vmatpush3.bf16.msra.mxu1 %v1097_v28  ;;  %v1134_v21 = vld [vmem:[#allocation11 + $0x40] sm:$0xff]   ;;  %v1141_v28 = vld [vmem:[#allocation11 + $0x18] sm:$0xff]  }
  0x88   :  { %231 = vmatprep.subr.bf16.mxu0 %v1083_v22  ;;  %987 = vmatprep.subr.bf16.mxu1 %v1098_v30  ;;  %v1135_v22 = vld [vmem:[#allocation11] sm:$0xff]  }
  0x89   :  { %v1143_v30 = vld [vmem:[#allocation11 + $0x20] sm:$0xff]  }
  0x8b   :  { %232 = vmatpush1.bf16.msra.mxu0 %v1085_v26  ;;  %988 = vmatpush3.bf16.msra.mxu1 %v1099_v31  ;;  %v1139_v26 = vld [vmem:[#allocation11 + $0x10] sm:$0xff]   ;;  %v1144_v31 = vld [vmem:[#allocation11 + $0x68] sm:$0xff]  }
  0x8c   :  { %989 = vmatprep.subr.bf16.mxu1 %v1100_v32  ;;  %1028 = vmatprep.subr.bf16.mxu0 %v1325_v35  ;;  %v1145_v32 = vld [vmem:[#allocation11 + $0x28] sm:$0xff]  }
  0x8e   :  { %250 = vmatmul.mubr.bf16.vlgmr.msra.gmra.mrb[0].mxu0 %v108_v29  ;;  %v1142_v29 = vld [vmem:[#allocation11 + $0x60] sm:$0xff]  }
  0x8f   :  { %990 = vmatpush3.bf16.msra.mxu1 %v1101_v33  ;;  %1029 = vmatpush3.bf16.msra.mxu0 %v1102_v34  ;;  %v933_v33 = vld [vmem:[%s1502_s6 + $0x3] ss:$0 sm:$0xff] }
  0x90   :  { %1030 = vmatprep.subr.bf16.mxu0 %v1325_v35  ;;  %1044 = vmatprep.mubr.msk.bf16.mxu0 %vm1326_vm0, %v1325_v35 }
  0x91   :  { %660 = vmatprep.subr.bf16.mxu1 %v1112_v61 }
  0x93   :  { %1031 = vmatpush3.bf16.msra.mxu0 %v1103_v36 }
  0x94   :  { %1032 = vmatprep.subr.bf16.mxu0 %v1325_v35 }
  0x97   :  { %1033 = vmatpush3.bf16.msra.mxu0 %v1104_v37 }
  0x98   :  { %1034 = vmatprep.subr.bf16.mxu0 %v1325_v35 }
  0x9b   :  { %1035 = vmatpush3.bf16.msra.mxu0 %v1105_v38 }
  0x9c   :  { %1036 = vmatprep.subr.bf16.mxu0 %v1325_v35 }
  0x9f   :  { %1037 = vmatpush3.bf16.msra.mxu0 %v1106_v39 }
  0xa0   :  { %1038 = vmatprep.subr.bf16.mxu0 %v1325_v35 }
  0xa3   :  { %1039 = vmatpush3.bf16.msra.mxu0 %v1107_v40 }
  0xa4   :  { %1040 = vmatprep.subr.bf16.mxu0 %v1325_v35 }
  0xa7   :  { %1041 = vmatpush3.bf16.msra.mxu0 %v1108_v58 }
  0xa8   :  { %1042 = vmatprep.subr.bf16.mxu0 %v1325_v35 }
  0xab   :  { %1043 = vmatpush3.bf16.msra.mxu0 %v1109_v59 }
  0xac   :  { %1006 = vmatprep.subr.bf16.mxu0 %v1134_v21 }
 0x161   :  { %v251_v48 = vpop.f32.mrb[0].mxu0 }
 0x162   :  { %v252_v49 = vadd.f32 %v251_v48, %v130_v46  ;;  %v253_v50 = vpop.f32.mrb[1].mxu0  ;;  %v1148_v46 = vld [vmem:[#allocation11 + $0x78] sm:$0xff]  }
 0x163   :  { %v254_v51 = vadd.f32 %v253_v50, %v134_v47  ;;  %v255_v52 = vpop.f32.mrb[2].mxu0  ;;  %v1149_v47 = vld [vmem:[#allocation11 + $0x38] sm:$0xff]  }
 0x164   :  { %v258_v53 = vmax.f32 %v252_v49, 0.0  ;;  %v256_v54 = vpop.f32.mrb[3].mxu0  ;;  %v568_v48 = vld [vmem:[%s1502_s6 + $0x4] sm:$0x3] }
 0x165   :  { %v259_v55 = vmax.f32 %v254_v51, 0.0  ;;  %v573_v49 = vrot.slane %v568_v48, %v129_v43  ;;  %v577_v50 = vrot.slane %v568_v48, %v133_v45  ;;  %v958_v43 = vld [vmem:[%s1502_s6 + $0x6] ss:$0 sm:$0xff] }
 0x166   :  { %v260_v57 = vpack.c.bf16 %v258_v53, %v258_v53 }
 0x167   :  { %v261_v56 = vpack.c.bf16 %v259_v55, %v259_v55 }
 0x169   :  { %429 = vmatprep.mubr.bf16.mxu1 %v261_v56 }
 0x16a   :  { %430 = vmatmul.mubr.bf16.vlgmr.msra.gmra.mrb[0].mxu1 %v260_v57 }
 0x16b   :  { %692 = vmatprep.mubr.bf16.mxu1 %v1324_v0  ;;  %661 = vmatpush1.bf16.msra.mxu1 %v1110_v60  ;;  %v1119_v0 = vld [vmem:[#allocation10 + $0x30] ss:$8 sps:$4 sm:$0xff]  }
 0x16c   :  { %662 = vmatprep.subr.bf16.mxu1 %v1115_v62 }
 0x16f   :  { %663 = vmatpush1.bf16.msra.mxu1 %v1113_v63 }
 0x170   :  { %664 = vmatprep.subr.bf16.mxu1 %v1118_v1 }
 0x173   :  { %665 = vmatpush1.bf16.msra.mxu1 %v1116_v2 }
 0x174   :  { %666 = vmatprep.subr.bf16.mxu1 %v1121_v3 }
 0x177   :  { %667 = vmatpush1.bf16.msra.mxu1 %v1119_v0 }
 0x178   :  { %668 = vmatprep.subr.bf16.mxu1 %v1124_v4 }
 0x17b   :  { %669 = vmatpush1.bf16.msra.mxu1 %v1122_v5 }
 0x17c   :  { %670 = vmatprep.subr.bf16.mxu1 %v1127_v6 }
 0x17f   :  { %671 = vmatpush1.bf16.msra.mxu1 %v1125_v7 }
 0x180   :  { %672 = vmatprep.subr.bf16.mxu1 %v1130_v8 }
 0x183   :  { %673 = vmatpush1.bf16.msra.mxu1 %v1128_v9 }
 0x184   :  { %674 = vmatprep.subr.bf16.mxu1 %v1133_v19 }
 0x187   :  { %675 = vmatpush1.bf16.msra.mxu1 %v1131_v20 }
 0x23d   :  { %v991_v10 = vpop.f32.mrb[0].mxu1 }
 0x23e   :  { %v992_v12 = vpop.f32.mrb[1].mxu1 }
 0x23f   :  { %v993_v13 = vadd.f32 %v992_v12, %v991_v10  ;;  %v994_v14 = vpop.f32.mrb[2].mxu1 }
 0x240   :  { %v995_v15 = vpop.f32.mrb[3].mxu1 }
 0x241   :  { %v432_v16 = vadd.f32 %v993_v13, %v916_v11 }
 0x243   :  { %v437_v17 = vmax.f32 %v432_v16, 0.0 }
 0x245   :  { %v438_v18 = vpack.c.bf16 %v437_v17, %v437_v17 }
 0x247   :  { %1045 = vmatmul.mubr.bf16.vlgmr.msra.gmra.mrb[4].mxu0 %v438_v18 }
 0x248   :  { %1007 = vmatpush3.bf16.msra.mxu0 %v1135_v22 }
 0x249   :  { %1008 = vmatprep.subr.bf16.mxu0 %v1136_v23 }
 0x24c   :  { %1009 = vmatpush3.bf16.msra.mxu0 %v1137_v24 }
 0x24d   :  { %1010 = vmatprep.subr.bf16.mxu0 %v1138_v25 }
 0x250   :  { %1011 = vmatpush3.bf16.msra.mxu0 %v1139_v26 }
 0x251   :  { %1012 = vmatprep.subr.bf16.mxu0 %v1140_v27 }
 0x254   :  { %1013 = vmatpush3.bf16.msra.mxu0 %v1141_v28 }
 0x255   :  { %1014 = vmatprep.subr.bf16.mxu0 %v1142_v29 }
 0x258   :  { %1015 = vmatpush3.bf16.msra.mxu0 %v1143_v30 }
 0x259   :  { %1016 = vmatprep.subr.bf16.mxu0 %v1144_v31 }
 0x25c   :  { %1017 = vmatpush3.bf16.msra.mxu0 %v1145_v32 }
 0x25d   :  { %1018 = vmatprep.subr.bf16.mxu0 %v1146_v41 }
 0x260   :  { %1019 = vmatpush3.bf16.msra.mxu0 %v1147_v44 }
 0x261   :  { %1020 = vmatprep.subr.bf16.mxu0 %v1148_v46 }
 0x264   :  { %1021 = vmatpush3.bf16.msra.mxu0 %v1149_v47 }
 0x31a   :  { %v544_v34 = vpop.f32.mrb[4].mxu0 }
 0x31b   :  { %v545_v35 = vadd.f32 %v933_v33, %v544_v34  ;;  %v1046_v36 = vpop.f32.mrb[5].mxu0 }
 0x31c   :  { %v547_v37 = vpop.f32.mrb[6].mxu0 }
 0x31d   :  { %v550_v38 = vmax.f32 %v545_v35, 0.0  ;;  %v1047_v39 = vpop.f32.mrb[7].mxu0 }
 0x31f   :  { %v551_v40 = vpack.c.bf16 %v550_v38, %v550_v38 }
 0x321   :  { %693 = vmatmul.mubr.bf16.vlgmr.msra.gmra.mrb[4].mxu1 %v551_v40 }
 0x3f4   :  { %v694_v51 = vpop.f32.mrb[4].mxu1 }
 0x3f5   :  { %v695_v52 = vadd.f32 %v694_v51, %v573_v49  ;;  %v696_v53 = vpop.f32.mrb[5].mxu1 }
 0x3f6   :  { %v697_v54 = vadd.f32 %v696_v53, %v577_v50  ;;  %v698_v55 = vpop.f32.mrb[6].mxu1 }
 0x3f7   :  { %v701_v56 = vmax.f32 %v695_v52, 0.0  ;;  %v699_v57 = vpop.f32.mrb[7].mxu1 }
 0x3f8   :  { %v702_v58 = vmax.f32 %v697_v54, 0.0 }
 0x3f9   :  { %v703_v60 = vpack.c.bf16 %v701_v56, %v701_v56 }
 0x3fa   :  { %v704_v59 = vpack.c.bf16 %v702_v58, %v702_v58 }
 0x3fc   :  { %872 = vmatprep.mubr.bf16.mxu0 %v704_v59 }
 0x3fd   :  { %873 = vmatmul.mubr.bf16.vlgmr.msra.gmra.mrb[8].mxu0 %v703_v60 }
 0x4d0   :  { %v1022_v61 = vpop.f32.mrb[8].mxu0 }
 0x4d1   :  { %v1023_v62 = vpop.f32.mrb[9].mxu0 }
 0x4d2   :  { %v1024_v42 = vadd.f32 %v1023_v62, %v1022_v61  ;;  %v1025_v45 = vpop.f32.mrb[10].mxu0 }
 0x4d3   :  { %v1026_v63 = vpop.f32.mrb[11].mxu0 }
 0x4d4   :  { %v875_v1 = vadd.f32 %v1024_v42, %v958_v43 }
 0x4d6   :  { %v880_v2 = vpack.c.bf16 %v875_v1, %v875_v1 }
 0x4d8   :  { %881 = vst [vmem:[#allocation13] sm:$0xf] %v880_v2 }
 0x4d9   :  { %1293 = shalt.err (!%p1290_p10)
}
 0x4da   :  { %s1294_s6 = scalar_lea.hbm %s1503_s7, 64 }
 0x4db   :  { %p1295_p11 = scmp.ne.s32.totalorder %s1503_s7, %s1294_s6  ;;  %p1298_p12 = scmp.lt.u32.totalorder %s1294_s6, %s1503_s7 }
 0x4dd   :  { %p1300_p13 = pnand %p1298_p12, %p1295_p11 }
 0x4df   :  { %1303 = shalt.err (!%p1300_p13)
}
 0x4e0   :  { %891 = dma.vmem_to_hbm [thread:$0]  %s889_s15, 64, %s1503_s7, [#allocation4]  }
 0x4e1   :  { %1312 = dma.done.wait [#allocation4], 64  }
 0x4e2   :  { %1313 = vsyncadd [#allocation4], 4294967232 }
 0x4e3   :  { %895 = vsyncpa [#allocation3], 1 }
 0x4e4   :  { %896 = vsyncpa [#allocation6], 1 }
 0x4e5   :  { %897 = vsyncpa [#allocation9], 1 }
 0x4e6   :  { %898 = vsyncpa [#allocation12], 1 }
 0x4e7   :  { %899 = vsyncpa [#allocation4], 1 }

</bundles_post_ra>
